<compile_context>
chip_gen: v6e
topology: v6e:2x2x1
jax: 0.10.0
libtpu: 0.0.40
codegen_flags: <defaults>
</compile_context>

<pallas_src>
import math

import jax
import jax.numpy as jnp
from jax.experimental import pallas as pl
from jax.experimental.pallas import tpu as pltpu

_SQRT_2_OVER_PI = math.sqrt(2.0 / math.pi)
_GELU_COEF = 0.044715

LANES = 128
# 4096 rows x 128 lanes x 4 B = 2 MiB per f32 buffer (cap chosen for v5e's
# 16 MiB scoped-VMEM default; comfortably inside v6e/v7x budgets too).
MAX_BLOCK_ROWS = 4096
# Try to keep at least this many grid steps so dual-TC chips (v7x) shard work.
MIN_GRID_STEPS = 4


def _fast_gelu_kernel(x_ref, o_ref):
    x = x_ref[...]
    xf = x.astype(jnp.float32)
    inner = _SQRT_2_OVER_PI * (xf + _GELU_COEF * (xf * xf * xf))
    y = 0.5 * xf * (1.0 + jnp.tanh(inner))
    o_ref[...] = y.astype(o_ref.dtype)


def _sublane_multiple(dtype):
    # f32 -> 8, bf16/f16 -> 16, int8/fp8 -> 32 (sublane packing granularity).
    itemsize = jnp.dtype(dtype).itemsize
    return max(8, 8 * (4 // max(1, itemsize)))


def _choose_block_rows(rows, dtype):
    sub = _sublane_multiple(dtype)
    if rows <= sub:
        return rows  # single full-extent block (equal to array dim -> allowed)
    br = min(MAX_BLOCK_ROWS, pl.cdiv(rows, MIN_GRID_STEPS))
    return max(sub, (br // sub) * sub)   # multiple of sublane granularity


def fast_gelu(x):
    orig_shape = x.shape
    orig_dtype = x.dtype
    flat = x.reshape(-1)                 # metadata-only for contiguous input
    n = flat.shape[0]

    # Pad only to lane (128) granularity, and only when actually needed; the
    # ragged last *block* is handled by Pallas via the cdiv grid below, so no
    # whole-tile pad / trailing slice (each of which costs an extra HBM pass).
    n_pad = pl.cdiv(n, LANES) * LANES
    padded = n_pad != n
    if padded:
        flat = jnp.pad(flat, (0, n_pad - n))

    x2d = flat.reshape(-1, LANES)        # metadata-only
    rows = x2d.shape[0]
    block_rows = _choose_block_rows(rows, orig_dtype)
    grid = (pl.cdiv(rows, block_rows),)

    out2d = pl.pallas_call(
        _fast_gelu_kernel,
        out_shape=jax.ShapeDtypeStruct((rows, LANES), orig_dtype),
        grid_spec=pltpu.PrefetchScalarGridSpec(
            num_scalar_prefetch=0,
            grid=grid,
            in_specs=[pl.BlockSpec((block_rows, LANES), lambda i: (i, 0))],
            out_specs=pl.BlockSpec((block_rows, LANES), lambda i: (i, 0)),
        ),
        compiler_params=pltpu.CompilerParams(
            dimension_semantics=("parallel",),
        ),
    )(x2d)

    out = out2d.reshape(-1)
    if padded:
        out = out[:n]                    # only on the rare non-128-multiple path
    return out.reshape(orig_shape)


def _fast_gelu_ref(x):
    xf = x.astype(jnp.float32)
    return (0.5 * xf * (1.0 + jnp.tanh(
        _SQRT_2_OVER_PI * (xf + _GELU_COEF * xf ** 3)))).astype(x.dtype)


if __name__ == "__main__":
    key = jax.random.PRNGKey(0)

    # NCHW-style input, same convention as the PyTorch module's typical use.
    x = jax.random.normal(key, (2, 4, 16, 16), dtype=jnp.float32)
    y = fast_gelu(x)
    jax.block_until_ready(y)
    y_ref = _fast_gelu_ref(x)
    assert y.shape == x.shape and y.dtype == x.dtype
    assert jnp.allclose(y, y_ref, atol=1e-5, rtol=1e-5)

    # Ragged case (element count not a multiple of 128) exercises the
    # 128-pad path + ragged last block handling.
    x2 = jax.random.normal(jax.random.PRNGKey(1), (3, 5, 7, 11), dtype=jnp.float32)
    y2 = fast_gelu(x2)
    jax.block_until_ready(y2)
    assert y2.shape == x2.shape and y2.dtype == x2.dtype
    assert jnp.allclose(y2, _fast_gelu_ref(x2), atol=1e-5, rtol=1e-5)

    print("KERNEL_OK")
</pallas_src>

<mosaic_0001>
module attributes {stable_mosaic.version = 11 : i64} {
  func.func @_fast_gelu_kernel(%arg0: i32, %arg1: memref<8x128xf32, #tpu.memory_space<vmem>>, %arg2: memref<8x128xf32, #tpu.memory_space<vmem>>) attributes {dimension_semantics = [#tpu.dimension_semantics<parallel>], iteration_bounds = array<i64: 2>, scalar_prefetch = 0 : i64, scratch_operands = 0 : i64, tpu.core_type = #tpu.core_type<tc>, window_params = [{transform_indices = @transform_0, window_bounds = array<i64: 8, 128>}, {transform_indices = @transform_1, window_bounds = array<i64: 8, 128>}]} {
    %c0 = arith.constant 0 : index
    %c0_0 = arith.constant 0 : index
    %0 = vector.load %arg1[%c0, %c0_0] : memref<8x128xf32, #tpu.memory_space<vmem>>, vector<8x128xf32>
    %1 = arith.mulf %0, %0 : vector<8x128xf32>
    %2 = arith.mulf %1, %0 : vector<8x128xf32>
    %cst = arith.constant 4.471500e-02 : f32
    %3 = vector.broadcast %cst : f32 to vector<8x128xf32>
    %4 = arith.mulf %3, %2 : vector<8x128xf32>
    %5 = arith.addf %0, %4 : vector<8x128xf32>
    %cst_1 = arith.constant 0.797884583 : f32
    %6 = vector.broadcast %cst_1 : f32 to vector<8x128xf32>
    %7 = arith.mulf %6, %5 : vector<8x128xf32>
    %cst_2 = arith.constant 5.000000e-01 : f32
    %8 = vector.broadcast %cst_2 : f32 to vector<8x128xf32>
    %9 = arith.mulf %8, %0 : vector<8x128xf32>
    %10 = math.tanh %7 : vector<8x128xf32>
    %cst_3 = arith.constant 1.000000e+00 : f32
    %11 = vector.broadcast %cst_3 : f32 to vector<8x128xf32>
    %12 = arith.addf %11, %10 : vector<8x128xf32>
    %13 = arith.mulf %9, %12 : vector<8x128xf32>
    %c0_4 = arith.constant 0 : index
    %c0_5 = arith.constant 0 : index
    %14 = vector.load %arg2[%c0_4, %c0_5] : memref<8x128xf32, #tpu.memory_space<vmem>>, vector<8x128xf32>
    tpu.vector_store %arg2[%c0_4, %c0_5], %13 {strides = array<i32>} : memref<8x128xf32, #tpu.memory_space<vmem>>, vector<8x128xf32>,
    return
  }
  func.func @transform_0(%arg0: i32) -> (i32, i32) {
    %c0_i32 = arith.constant 0 : i32
    %c0_i32_0 = arith.constant 0 : i32
    return %arg0, %c0_i32 : i32, i32
  }
  func.func @transform_1(%arg0: i32) -> (i32, i32) {
    %c0_i32 = arith.constant 0 : i32
    %c0_i32_0 = arith.constant 0 : i32
    return %arg0, %c0_i32 : i32, i32
  }
}

</mosaic_0001>

<bundles_post_ra>
// kernel: tpu_custom_call.1
= control target key start
LH: loop header
LB: loop body
LE: loop exit
PB: predicated region body
PF: predicated region fallthrough
CT: control target
= control target key end

     0   :  { %6 = vsyncpa [#allocation3], 0  ;;  %s534_s0 = inlined_call_operand.hbm [shape: f32[16,128], index: 0, kind: input, shape index: {}]   ;;  %s535_s1 = inlined_call_operand.hbm [shape: f32[16,128], index: 1, kind: output, shape index: {}]  }
   0x1   :  { %8 = vsyncpa [#allocation3 + $0x1], 0 }
   0x2   :  { %9 = vsyncpa [#allocation4], 0 }
   0x3   :  { %11 = vsyncpa [#allocation4 + $0x1], 0  ;;  %s393_s6 = smov 0   ;;  %s395_s7 = smov 0  }
   0x4   :  { %s397_s8 = smov 0   ;;  %s399_s9 = smov 0  }
   0x5 LB: > { %s414_s10 = sadd.s32 4294967295, %s379_s9   ;;  %s227_s11 = sadd.s32 4294967294, %s379_s9   ;;  %s379_s9 = sphi %s399_s9, %s552_s9   ;;  %s375_s8 = sphi %s397_s8, %s551_s8   ;;  %s371_s7 = sphi %s395_s7, %s550_s7   ;;  %s367_s6 = sphi %s393_s6, %s549_s6  }
   0x6   : > { %s418_s12 = sadd.s32 1, %s379_s9   ;;  %s24_s13 = sadd.s32 1, %s375_s8 }
   0x7   : > { %s21_s14 = ssub.s32 %s379_s9, %s418_s12  ;;  %p31_p0 = scmp.ne.s32.totalorder %s375_s8, %s371_s7 }
   0x8   : > { %p22_p1 = scmp.eq.s32.totalorder %s21_s14, 0  ;;  %p32_p2 = scmp.eq.s32.totalorder %s379_s9, 0 }
   0x9   : > { %p37_p3 = scmp.ne.s32.totalorder %s371_s7, %s367_s6  ;;  %p38_p4 = scmp.eq.s32.totalorder %s414_s10, 0 }
   0xa   : > { %s430_s15 = scalar_select %p22_p1, %s375_s8, %s24_s13  }
   0xb   : > { %p432_p5 = por %p32_p2, %p31_p0  ;;  %p436_p6 = por %p38_p4, %p37_p3 }
   0xc   : > { %p61_p7 = scmp.eq.s32.totalorder %s414_s10, 1  ;;  %p67_p8 = scmp.eq.s32.totalorder %s227_s11, 1 }
   0xd   : > { %s539_s17 = scalar_select %p436_p6, 1, 0 }
   0xe   : > { %p251_p10 = scmp.lt.s32.totalorder %s379_s9, 2  ;;  %p443_p11 = por %p61_p7, %p31_p0 }
   0xf   : > { %p447_p12 = por %p67_p8, %p37_p3  ;;  %s87_s20 = sand.u32 1, %s375_s8  }
  0x10   : > { %s540_s18 = scalar_select %p443_p11, 1, 0 }
  0x11   : > { %s541_s19 = scalar_select %p447_p12, 1, 0 }
  0x12   : > { %s231_s21 = sshll.u32 %s379_s9, 7  ;;  %s230_s22 = sshll.u32 %s87_s20, 3 }
  0x13   : > { %s456_s25 = scalar_lea.hbm %s534_s0, %s231_s21  ;;  %s91_s26 = scalar_lea.vmem [#allocation2], %s230_s22 }
  0x14   : > { %s98_s27 = sshll.u32 %s91_s26, 4  ;;  %p460_p13 = pnand %p251_p10, %p432_p5  ;;  %s464_s27 = int_to_ptr.vmem [resolvable:$true] %s98_s27 }
  0x15   : > { %s88_s29 = scalar_lea.sflag [#allocation3], %s87_s20  ;;  %s287_s30 = scalar_lea.hbm %s456_s25, 128 }
  0x16   : > { %p288_p2 = scmp.ne.s32.totalorder %s456_s25, %s287_s30  ;;  %p289_p3 = pneg %p460_p13 }
  0x17   : > { %s292_s4 = scalar_lea.hbm %s534_s0, 256  ;;  %p293_p5 = scmp.lt.s32.totalorder %s456_s25, %s534_s0 }
  0x18   : > { %p290_p4 = pnand %p289_p3, %p288_p2  ;;  %p294_p8 = scmp.lt.s32.totalorder %s292_s4, %s287_s30 }
  0x1a   : > { %p291_p7 = pneg %p290_p4  ;;  %p295_p10 = por %p294_p8, %p293_p5 }
  0x1c   : > { %p296_p9 = pnand %p295_p10, %p291_p7 }
  0x1e   : > { %299 = shalt.err (!%p296_p9)
}
  0x1f   : > { %s300_s13 = scalar_lea.vmem %s464_s27, 128  ;;  %s381_s14 = smov [#allocation2]  }
  0x20   : > { %p301_p0 = scmp.ne.s32.totalorder %s464_s27, %s300_s13  ;;  %s305_s16 = sshll.u32 %s381_s14, 4  ;;  %s306_s16 = int_to_ptr.vmem [resolvable:$false] %s305_s16 }
  0x21   : > { %s307_s20 = scalar_lea.vmem %s306_s16, 256  ;;  %p308_p4 = scmp.lt.s32.totalorder %s464_s27, %s306_s16 }
  0x22   : > { %p303_p1 = pnand %p301_p0, %p289_p3  ;;  %p309_p12 = scmp.lt.s32.totalorder %s307_s20, %s300_s13 }
  0x24   : > { %p304_p2 = pneg %p303_p1  ;;  %p310_p11 = por %p309_p12, %p308_p4 }
  0x26   : > { %p311_p6 = pnand %p310_p11, %p304_p2 }
  0x28   : > { %314 = shalt.err (!%p311_p6)
}
  0x29   : > { %246 = dma.hbm_to_vmem [thread:$0]  (!%p460_p13), %s456_s25, 128, %s464_s27, %s88_s29  }
  0x2a   : > { %p543_p9 = scmp.lt.s32.totalorder %s379_s9, 3  ;;  %p544_p7 = scmp.ge.s32.totalorder %s379_s9, 1 }
  0x2c   : > { %p104_p0 = pnand %p544_p7, %p543_p9 }
  0x2d   : > { %s491_s21 = sand.u32 (!%p104_p0), 1, %s371_s7   ;;  %p545_p6 = scmp.ne.s32.totalorder (!%p104_p0), %s539_s17, 0 }
  0x2e   : > { %107 = sbr.rel (%p104_p0) target bundleno = 94 (0x5e), region = 24  ;;  %s233_s22 = sshll.u32 (!%p104_p0), %s491_s21, 3 }
  0x2f   : > { %s110_s23 = scalar_lea.sflag (!%p104_p0), [#allocation3], %s491_s21  ;;  %s113_s24 = scalar_lea.vmem (!%p104_p0), [#allocation2], %s233_s22 }
  0x33   : > { %358 = dma.done.wait (%p545_p6), %s110_s23, 128  }
  0x34   : > { %360 = vsyncadd (%p545_p6), %s110_s23, 4294967168  ;;  %v132_v0 = vld [vmem:[%s113_s24] sm:$0xff]  ;;  %s131_s25 = scalar_lea.vmem [#allocation5], %s233_s22  ;;  %s236_s27 = sshll.u32 %s414_s10, 7 }
  0x35   : > { %v133_v1 = vmul.f32 %v132_v0, %v132_v0  ;;  %v138_v6 = vmul.f32 0.5, %v132_v0  ;;  %s157_s26 = sshll.u32 %s131_s25, 4  ;;  %s155_s29 = scalar_lea.hbm %s535_s1, %s236_s27  ;;  %s158_s26 = int_to_ptr.vmem [resolvable:$true] %s157_s26 }
  0x36   : > { %s144_s30 = scalar_lea.sflag [#allocation4], %s491_s21  ;;  %s315_s2 = scalar_lea.vmem %s158_s26, 128 }
  0x37   : > { %v134_v2 = vmul.f32 %v133_v1, %v132_v0  ;;  %p316_p11 = scmp.ne.s32.totalorder %s158_s26, %s315_s2  ;;  %p546_p12 = scmp.ne.s32.totalorder %s540_s18, 0 }
  0x38   : > { %s382_s3 = smov [#allocation5]  }
  0x39   : > { %v135_v3 = vmul.f32 0.044715, %v134_v2  ;;  %p317_p13 = pnand %p316_p11, %p546_p12  ;;  %s319_s4 = sshll.u32 %s382_s3, 4  ;;  %s320_s4 = int_to_ptr.vmem [resolvable:$false] %s319_s4 }
  0x3a   : > { %s321_s5 = scalar_lea.vmem %s320_s4, 256  ;;  %p322_p3 = scmp.lt.s32.totalorder %s158_s26, %s320_s4 }
  0x3b   : > { %v136_v4 = vadd.f32 %v135_v3, %v132_v0  ;;  %p318_p1 = pneg %p317_p13  ;;  %p323_p5 = scmp.lt.s32.totalorder %s321_s5, %s315_s2 }
  0x3d   : > { %v137_v5 = vmul.f32 0.7978846, %v136_v4  ;;  %p324_p8 = por %p323_p5, %p322_p3 }
  0x3f   : > { %285 = vtanh.f32 %v137_v5  ;;  %p325_p10 = pnand %p324_p8, %p318_p1 }
  0x4c   : > { %v286_v7 = vpop.eup %285 }
  0x4d   : > { %v140_v8 = vadd.f32 1.0, %v286_v7 }
  0x4f   : > { %v141_v9 = vmul.f32 %v140_v8, %v138_v6 }
  0x51   : > { %142 = vst [vmem:[%s131_s25] sm:$0xff] %v141_v9 }
  0x52   : > { %328 = shalt.err (!%p325_p10)
}
  0x53   : > { %s329_s10 = scalar_lea.hbm %s155_s29, 128  ;;  %s333_s14 = scalar_lea.hbm %s535_s1, 256 }
  0x54   : > { %p330_p2 = scmp.ne.s32.totalorder %s155_s29, %s329_s10  ;;  %p334_p7 = scmp.lt.s32.totalorder %s155_s29, %s535_s1 }
  0x55   : > { %p335_p0 = scmp.lt.s32.totalorder %s333_s14, %s329_s10 }
  0x56   : > { %p331_p4 = pnand %p330_p2, %p546_p12 }
  0x57   : > { %p336_p6 = por %p335_p0, %p334_p7 }
  0x58   : > { %p332_p9 = pneg %p331_p4 }
  0x5a   : > { %p337_p11 = pnand %p336_p6, %p332_p9 }
  0x5c   : > { %340 = shalt.err (!%p337_p11)
}
  0x5d   : > { %241 = dma.vmem_to_hbm [thread:$0]  (%p546_p12), %s158_s26, 128, %s155_s29, %s144_s30  }
  0x5e PF: > { %s169_s21 = sand.u32 1, %s367_s6   ;;  %p547_p13 = scmp.ne.s32.totalorder %s541_s19, 0 }
  0x5f   : > { %p548_p1 = scmp.ge.s32.totalorder %s379_s9, 2  ;;  %s170_s22 = scalar_lea.sflag [#allocation4], %s169_s21 }
  0x61   : > { %p248_p3 = pnand %p548_p1, %p547_p13 }
  0x63   : > { %p249_p5 = pneg %p248_p3 }
  0x65   : > { %362 = dma.done.wait (%p249_p5), %s170_s22, 128  }
  0x66   : > { %364 = vsyncadd (%p249_p5), %s170_s22, 4294967168  ;;  %p14_p8 = scmp.ge.s32.totalorder %s418_s12, 4   ;;  %s549_s6 = smov %s371_s7 }
  0x67   : > { %s550_s7 = smov %s375_s8  ;;  %s551_s8 = smov %s430_s15 }
  0x68   : > { %s552_s9 = smov %s418_s12  ;;  %16 = sbr.rel (!%p14_p8) target bundleno = 5 (0x5), region = 69 }
  0x6d   :  { %175 = vsyncpa [#allocation3], 1 }
  0x6e   :  { %177 = vsyncpa [#allocation3 + $0x1], 1 }
  0x6f   :  { %178 = vsyncpa [#allocation4], 1 }
  0x70   :  { %180 = vsyncpa [#allocation4 + $0x1], 1 }

</bundles_post_ra>
